<compile_context>
chip_gen: v7x
topology: tpu7x:2x2x1
jax: 0.10.0
libtpu: 0.0.40
codegen_flags: <defaults>
</compile_context>

<pallas_src>
import functools

import jax
import jax.numpy as jnp
from jax.experimental import pallas as pl
from jax.experimental.pallas import tpu as pltpu


# ---------------------------------------------------------------------------
# In-kernel helpers
# ---------------------------------------------------------------------------
def _silu(h, approx):
    # reciprocal goes to the EUP slot; exact (approx=False) in f32 mode
    return h * pl.reciprocal(1.0 + jnp.exp(-h), approx=approx)


def _temporal_conv3(am, w_ref, cb_ref, acc_ref, n_frames, hw_tile):
    """3-tap (3,1,1) temporal conv as three large MXU matmuls into f32 scratch.

    am      : (T*HWt, Cp) activation in MXU dtype
    w_ref   : (3, Cp, Cp) weights, w[k] applied to frame t+k-1
    cb_ref  : (1, Cp) bias (added once, in the accumulator init)
    acc_ref : (T*HWt, Cp) f32 VMEM scratch (overwritten here)
    """
    acc_ref[...] = (jnp.dot(am, w_ref[1], preferred_element_type=jnp.float32)
                    + cb_ref[...])
    if n_frames > 1:
        rows = (n_frames - 1) * hw_tile
        # out[t] += in[t-1] @ w[0]  -> accumulate into rows [HWt, T*HWt)
        acc_ref[hw_tile:, :] += jnp.dot(am[:rows, :], w_ref[0],
                                        preferred_element_type=jnp.float32)
        # out[t] += in[t+1] @ w[2]  -> accumulate into rows [0, (T-1)*HWt)
        acc_ref[:rows, :] += jnp.dot(am[hw_tile:, :], w_ref[2],
                                     preferred_element_type=jnp.float32)
    # TODO(synk): for tiny-C blocks (Cp=128) stacking the 3 taps into a single
    # K=3*Cp contraction would raise MXU utilization on v6e/v7x.


# ---------------------------------------------------------------------------
# Pass 1: GroupNorm-1 statistics of x, accumulated across HW tiles
# ---------------------------------------------------------------------------
def _gn_stats_kernel(x_ref, sum_ref, sq_ref):
    @pl.when(pl.program_id(1) == 0)
    def _init():
        sum_ref[...] = jnp.zeros_like(sum_ref)
        sq_ref[...] = jnp.zeros_like(sq_ref)

    x = x_ref[0].astype(jnp.float32)          # (T, HWt, Cp)
    sum_ref[0] += jnp.sum(x, axis=1)          # sublane (XLU) reductions
    sq_ref[0] += jnp.sum(x * x, axis=1)


# ---------------------------------------------------------------------------
# Pass 2: GN1 apply + SiLU + temporal conv1 -> h1, plus GN2 stats accumulate
# ---------------------------------------------------------------------------
def _gn_silu_conv1_kernel(x_ref, scale_ref, shift_ref, w_ref, cb_ref,
                          h_ref, hsum_ref, hsq_ref, acc_ref,
                          *, n_frames, hw_tile, mxu_dtype, approx_recip):
    @pl.when(pl.program_id(1) == 0)
    def _init():
        hsum_ref[...] = jnp.zeros_like(hsum_ref)
        hsq_ref[...] = jnp.zeros_like(hsq_ref)

    T, HWt = n_frames, hw_tile
    x = x_ref[0].astype(jnp.float32)                               # (T, HWt, Cp)
    a = x * scale_ref[0][:, None, :] + shift_ref[0][:, None, :]    # GN1 apply
    a = _silu(a, approx_recip)
    am = a.astype(mxu_dtype).reshape(T * HWt, -1)

    _temporal_conv3(am, w_ref, cb_ref, acc_ref, T, HWt)

    h = acc_ref[...].reshape(T, HWt, -1)                           # f32
    h_ref[0] = h.astype(h_ref.dtype)                               # single store
    hsum_ref[0] += jnp.sum(h, axis=1)                              # GN2 stats
    hsq_ref[0] += jnp.sum(h * h, axis=1)


# ---------------------------------------------------------------------------
# Pass 3: GN2 apply + SiLU + temporal conv2 + residual blend -> out
# ---------------------------------------------------------------------------
def _gn_silu_conv2_blend_kernel(x_ref, h_ref, scale_ref, shift_ref, w_ref,
                                cb_ref, coef_ref, out_ref, acc_ref,
                                *, n_frames, hw_tile, mxu_dtype, approx_recip):
    T, HWt = n_frames, hw_tile
    h = h_ref[0].astype(jnp.float32)                               # (T, HWt, Cp)
    a = h * scale_ref[0][:, None, :] + shift_ref[0][:, None, :]    # GN2 apply
    a = _silu(a, approx_recip)
    am = a.astype(mxu_dtype).reshape(T * HWt, -1)

    _temporal_conv3(am, w_ref, cb_ref, acc_ref, T, HWt)

    # dropout(p=0.0) == identity
    # folded blend: out = cx*x + ch*h2 ; residual read in the input precision
    x = x_ref[0].astype(jnp.float32).reshape(T * HWt, -1)
    out = coef_ref[0] * x + coef_ref[1] * acc_ref[...]
    out_ref[0] = out.reshape(T, HWt, -1).astype(out_ref.dtype)     # single store


# ---------------------------------------------------------------------------
# Host-side helpers
# ---------------------------------------------------------------------------
def _fold_gn(sums, sumsq, gamma_p, beta_p, gsum, gbcast, count, eps):
    """Per-(b, t, channel) GN scale/shift from accumulated channel sums."""
    mean_g = jnp.einsum("btc,cg->btg", sums, gsum) / count
    ex2_g = jnp.einsum("btc,cg->btg", sumsq, gsum) / count
    var_g = jnp.maximum(ex2_g - mean_g * mean_g, 0.0)
    inv_g = jax.lax.rsqrt(var_g + eps)
    mean_c = jnp.einsum("btg,gc->btc", mean_g, gbcast)
    inv_c = jnp.einsum("btg,gc->btc", inv_g, gbcast)
    scale = inv_c * gamma_p[None, None, :]
    shift = beta_p[None, None, :] - mean_c * scale
    return scale, shift


def temporal_resnet_block(x_nchw, params, *, n_frames, groups, eps=1e-6,
                          output_scale_factor=1.0, mxu_dtype=jnp.bfloat16,
                          hw_tile=None, vmem_budget_bytes=48 * 1024 * 1024):
    BT, C, H, W = x_nchw.shape
    assert BT % n_frames == 0 and C % groups == 0
    B, T = BT // n_frames, n_frames
    HW, cg = H * W, C // groups
    Cp = ((C + 127) // 128) * 128             # lane-dense channel padding
    in_dtype = x_nchw.dtype
    f32 = jnp.float32
    ib, mb = jnp.dtype(in_dtype).itemsize, jnp.dtype(mxu_dtype).itemsize

    # ---- spatial tile (grid axis over HW) -----------------------------------
    assert HW % 8 == 0, "H*W must be a multiple of 8 (sublane tiling)"
    if hw_tile is None:
        # approx. resident bytes per HW row (double-buffered blocks + scratch)
        row_bytes = T * Cp * (2 * ib + 2 * mb + 2 * ib + 4)
        hw_tile = 8
        for t in range(HW, 7, -8):
            if HW % t == 0 and t * row_bytes <= vmem_budget_bytes:
                hw_tile = t
                break
    assert HW % hw_tile == 0 and hw_tile % 8 == 0
    n_hw = HW // hw_tile

    # ---- layout: (B*T, C, H, W) -> (B, T, HW, Cp), original precision -------
    def pad_c(a):
        p = Cp - a.shape[-1]
        return a if p == 0 else jnp.pad(a, [(0, 0)] * (a.ndim - 1) + [(0, p)])

    x = x_nchw.reshape(B, T, C, H, W).transpose(0, 1, 3, 4, 2).reshape(B, T, HW, C)
    x = pad_c(x)            # NOT rounded to bf16: residual & GN stats stay exact

    # torch Conv3d weight (Cout, Cin, 3[,1,1]) -> (3, Cin_p, Cout_p): y = x @ w[k]
    def conv_w(w):
        w = jnp.transpose(w, (2, 1, 0))
        p = Cp - C
        if p:
            w = jnp.pad(w, ((0, 0), (0, p), (0, p)))
        return w.astype(mxu_dtype)

    w1, w2 = conv_w(params["conv1_w"]), conv_w(params["conv2_w"])

    def vec(v):                                # (C,) -> (Cp,) f32
        return pad_c(v.astype(f32))

    gamma1, beta1 = vec(params["gamma1"]), vec(params["beta1"])
    gamma2, beta2 = vec(params["gamma2"]), vec(params["beta2"])
    cb1 = vec(params["conv1_b"]).reshape(1, Cp)
    cb2 = vec(params["conv2_b"]).reshape(1, Cp)

    # factored channel<->group maps (padded channels map to no group -> stay 0)
    ch_idx = jnp.arange(Cp)
    gid = jnp.where(ch_idx < C, ch_idx // cg, groups)
    gsum = (gid[:, None] == jnp.arange(groups)[None, :]).astype(f32)
    gbcast = gsum.T
    count = float(HW * cg)

    # folded blend coefficients: out = cx * x + ch * h2
    alpha = jnp.clip(params["alpha"].astype(f32), 0.0, 1.0)          # (1,)
    ch_coef = (1.0 - alpha) / output_scale_factor
    coef = jnp.concatenate([alpha + ch_coef, ch_coef])               # (2,)

    # ---- specs ---------------------------------------------------------------
    tile_spec = pl.BlockSpec((1, T, hw_tile, Cp), lambda b, h: (b, 0, h, 0))
    per_b_spec = pl.BlockSpec((1, T, Cp), lambda b, h: (b, 0, 0))
    smem_spec = pl.BlockSpec(memory_space=pltpu.MemorySpace.SMEM)

    def const_spec(shape):
        # grid-invariant operands: single-buffer to save VMEM (fallback if the
        # installed JAX does not expose pipeline_mode).
        idx = lambda b, h, _n=len(shape): (0,) * _n
        try:
            return pl.BlockSpec(shape, idx, pipeline_mode=pl.Buffered(1))
        except Exception:
            return pl.BlockSpec(shape, idx)

    # vmem limit derived from actual block sizes (clamped to [32, 100] MiB)
    est = (T * hw_tile * Cp * (2 * ib + 2 * mb + 2 * ib + 4)
           + 2 * 3 * Cp * Cp * mb + 8 * T * Cp * 4)
    vmem_limit = max(32 << 20, min(100 << 20, int(est * 1.5) + (2 << 20)))

    cp_reduce = pltpu.CompilerParams(
        dimension_semantics=("parallel", "arbitrary"), vmem_limit_bytes=vmem_limit)
    cp_parallel = pltpu.CompilerParams(
        dimension_semantics=("parallel", "parallel"), vmem_limit_bytes=vmem_limit)

    grid = (B, n_hw)
    approx = (mxu_dtype != jnp.float32)

    # ---- pass 1: GroupNorm-1 statistics of x ---------------------------------
    xsum, xsq = pl.pallas_call(
        _gn_stats_kernel,
        out_shape=(jax.ShapeDtypeStruct((B, T, Cp), f32),
                   jax.ShapeDtypeStruct((B, T, Cp), f32)),
        grid=grid,
        in_specs=[tile_spec],
        out_specs=(per_b_spec, per_b_spec),
        compiler_params=cp_reduce,
    )(x)
    scale1, shift1 = _fold_gn(xsum, xsq, gamma1, beta1, gsum, gbcast, count, eps)

    # ---- pass 2: GN1 + SiLU + conv1 -> h1 (+ GN2 statistics) -----------------
    h1, hsum, hsq = pl.pallas_call(
        functools.partial(_gn_silu_conv1_kernel, n_frames=T, hw_tile=hw_tile,
                          mxu_dtype=mxu_dtype, approx_recip=approx),
        out_shape=(jax.ShapeDtypeStruct((B, T, HW, Cp), mxu_dtype),
                   jax.ShapeDtypeStruct((B, T, Cp), f32),
                   jax.ShapeDtypeStruct((B, T, Cp), f32)),
        grid=grid,
        in_specs=[tile_spec, per_b_spec, per_b_spec,
                  const_spec((3, Cp, Cp)), const_spec((1, Cp))],
        out_specs=(tile_spec, per_b_spec, per_b_spec),
        scratch_shapes=[pltpu.VMEM((T * hw_tile, Cp), f32)],
        compiler_params=cp_reduce,
    )(x, scale1, shift1, w1, cb1)
    # TODO(synk): temb projection path not implemented -- forward is exercised
    # with temb=None (the PyTorch code adds a 5-D temb to a 4-D hidden state).
    scale2, shift2 = _fold_gn(hsum, hsq, gamma2, beta2, gsum, gbcast, count, eps)

    # ---- pass 3: GN2 + SiLU + conv2 + residual blend -------------------------
    out = pl.pallas_call(
        functools.partial(_gn_silu_conv2_blend_kernel, n_frames=T,
                          hw_tile=hw_tile, mxu_dtype=mxu_dtype,
                          approx_recip=approx),
        out_shape=jax.ShapeDtypeStruct((B, T, HW, Cp), in_dtype),
        grid=grid,
        in_specs=[tile_spec, tile_spec, per_b_spec, per_b_spec,
                  const_spec((3, Cp, Cp)), const_spec((1, Cp)), smem_spec],
        out_specs=tile_spec,
        scratch_shapes=[pltpu.VMEM((T * hw_tile, Cp), f32)],
        compiler_params=cp_parallel,
    )(x, h1, scale2, shift2, w2, cb2, coef)

    # drop channel padding, back to NCHW
    out = out[..., :C].reshape(B, T, H, W, C).transpose(0, 1, 4, 2, 3)
    return out.reshape(BT, C, H, W).astype(in_dtype)


# ---------------------------------------------------------------------------
# Pure-JAX reference (mirrors the PyTorch forward, temb=None)
# ---------------------------------------------------------------------------
def ref_forward(x_nchw, params, *, n_frames, groups, eps=1e-6,
                output_scale_factor=1.0):
    BT, C, H, W = x_nchw.shape
    B, T = BT // n_frames, n_frames

    def gn(h, gamma, beta):
        N, Ch = h.shape[:2]
        hr = h.reshape(N, groups, Ch // groups, H, W)
        mean = hr.mean(axis=(2, 3, 4), keepdims=True)
        var = hr.var(axis=(2, 3, 4), keepdims=True)
        hn = ((hr - mean) / jnp.sqrt(var + eps)).reshape(N, Ch, H, W)
        return hn * gamma[None, :, None, None] + beta[None, :, None, None]

    def silu(h):
        return h * jax.nn.sigmoid(h)

    def tconv(h, w, b):
        h5 = h.reshape(B, T, -1, H, W)
        hp = jnp.pad(h5, ((0, 0), (1, 1), (0, 0), (0, 0), (0, 0)))
        out = sum(jnp.einsum('btchw,dc->btdhw', hp[:, k:k + T], w[:, :, k])
                  for k in range(3))
        out = out + b[None, None, :, None, None]
        return out.reshape(BT, -1, H, W)

    h = gn(x_nchw, params["gamma1"], params["beta1"])
    h = silu(h)
    h = tconv(h, params["conv1_w"], params["conv1_b"])
    h = gn(h, params["gamma2"], params["beta2"])
    h = silu(h)
    h = tconv(h, params["conv2_w"], params["conv2_b"])
    out = (x_nchw + h) / output_scale_factor
    alpha = jnp.clip(params["alpha"], 0.0, 1.0)[0]
    return alpha * x_nchw + (1 - alpha) * out


if __name__ == "__main__":
    B, T, C, H, W = 2, 8, 32, 8, 8          # input (B*T, C, H, W) = (16, 32, 8, 8)
    groups = 8
    ks = jax.random.split(jax.random.PRNGKey(0), 10)
    x = jax.random.normal(ks[0], (B * T, C, H, W), jnp.float32)
    params = dict(
        gamma1=1.0 + 0.1 * jax.random.normal(ks[1], (C,), jnp.float32),
        beta1=0.1 * jax.random.normal(ks[2], (C,), jnp.float32),
        gamma2=1.0 + 0.1 * jax.random.normal(ks[3], (C,), jnp.float32),
        beta2=0.1 * jax.random.normal(ks[4], (C,), jnp.float32),
        conv1_w=0.1 * jax.random.normal(ks[5], (C, C, 3), jnp.float32),
        conv1_b=0.1 * jax.random.normal(ks[6], (C,), jnp.float32),
        conv2_w=0.1 * jax.random.normal(ks[7], (C, C, 3), jnp.float32),
        conv2_b=0.1 * jax.random.normal(ks[8], (C,), jnp.float32),
        # __init__ sets alpha=1.0 (output==input); use 0.25 so the residual /
        # conv path is actually exercised.
        alpha=jnp.array([0.25], jnp.float32),
    )

    ref = ref_forward(x, params, n_frames=T, groups=groups)

    # f32 MXU path with HW split into 2 spatial tiles (exercises the
    # cross-tile GroupNorm-stat accumulation), bf16 path with auto tile size.
    out_f32 = jax.block_until_ready(
        temporal_resnet_block(x, params, n_frames=T, groups=groups,
                              mxu_dtype=jnp.float32, hw_tile=32))
    out_bf16 = jax.block_until_ready(
        temporal_resnet_block(x, params, n_frames=T, groups=groups,
                              mxu_dtype=jnp.bfloat16))

    assert out_f32.shape == x.shape and out_bf16.shape == x.shape
    err_f32 = float(jnp.max(jnp.abs(out_f32 - ref)))
    err_bf16 = float(jnp.max(jnp.abs(out_bf16 - ref)))
    if err_f32 < 1e-3 and err_bf16 < 1e-1:   # bf16 path: bf16-scale tolerance
        print("KERNEL_OK")
    else:
        print(f"MISMATCH err_f32={err_f32} err_bf16={err_bf16}")
</pallas_src>

<mosaic_0001>
module attributes {stable_mosaic.version = 11 : i64} {
  func.func @_gn_stats_kernel(%arg0: i32, %arg1: i32, %arg2: memref<1x8x32x128xf32, #tpu.memory_space<vmem>>, %arg3: memref<1x8x128xf32, #tpu.memory_space<vmem>>, %arg4: memref<1x8x128xf32, #tpu.memory_space<vmem>>) attributes {dimension_semantics = [#tpu.dimension_semantics<parallel>, #tpu.dimension_semantics<arbitrary>], iteration_bounds = array<i64: 2, 2>, scalar_prefetch = 0 : i64, scratch_operands = 0 : i64, tpu.core_type = #tpu.core_type<tc>, window_params = [{transform_indices = @transform_0, window_bounds = array<i64: 1, 8, 32, 128>}, {transform_indices = @transform_1, window_bounds = array<i64: 1, 8, 128>}, {transform_indices = @transform_2, window_bounds = array<i64: 1, 8, 128>}]} {
    %c0_i32 = arith.constant 0 : i32
    %0 = arith.cmpi eq, %arg1, %c0_i32 : i32
    %1 = arith.extui %0 : i1 to i32
    %c0_i32_0 = arith.constant 0 : i32
    %2 = arith.cmpi ne, %1, %c0_i32_0 : i32
    scf.if %2 {
      %cst_17 = arith.constant 0.000000e+00 : f32
      %20 = vector.broadcast %cst_17 : f32 to vector<1x8x128xf32>
      %c0_18 = arith.constant 0 : index
      %c0_19 = arith.constant 0 : index
      %c0_20 = arith.constant 0 : index
      %21 = vector.load %arg3[%c0_18, %c0_19, %c0_20] : memref<1x8x128xf32, #tpu.memory_space<vmem>>, vector<1x8x128xf32>
      tpu.vector_store %arg3[%c0_18, %c0_19, %c0_20], %20 {strides = array<i32>} : memref<1x8x128xf32, #tpu.memory_space<vmem>>, vector<1x8x128xf32>,
      %cst_21 = arith.constant 0.000000e+00 : f32
      %22 = vector.broadcast %cst_21 : f32 to vector<1x8x128xf32>
      %c0_22 = arith.constant 0 : index
      %c0_23 = arith.constant 0 : index
      %c0_24 = arith.constant 0 : index
      %23 = vector.load %arg4[%c0_22, %c0_23, %c0_24] : memref<1x8x128xf32, #tpu.memory_space<vmem>>, vector<1x8x128xf32>
      tpu.vector_store %arg4[%c0_22, %c0_23, %c0_24], %22 {strides = array<i32>} : memref<1x8x128xf32, #tpu.memory_space<vmem>>, vector<1x8x128xf32>,
    } else {
    }
    %c0 = arith.constant 0 : index
    %c0_1 = arith.constant 0 : index
    %c0_2 = arith.constant 0 : index
    %c0_3 = arith.constant 0 : index
    %3 = vector.load %arg2[%c0, %c0_1, %c0_2, %c0_3] : memref<1x8x32x128xf32, #tpu.memory_space<vmem>>, vector<1x8x32x128xf32>
    %4 = vector.shape_cast %3 : vector<1x8x32x128xf32> to vector<8x32x128xf32>
    %c0_4 = arith.constant 0 : index
    %c0_5 = arith.constant 0 : index
    %c0_6 = arith.constant 0 : index
    %5 = vector.load %arg3[%c0_4, %c0_5, %c0_6] : memref<1x8x128xf32, #tpu.memory_space<vmem>>, vector<1x8x128xf32>
    %6 = vector.shape_cast %5 : vector<1x8x128xf32> to vector<8x128xf32>
    %cst = arith.constant dense<0.000000e+00> : vector<8x128xf32>
    %7 = vector.multi_reduction <add>, %4, %cst [1] : vector<8x32x128xf32> to vector<8x128xf32>
    %8 = arith.addf %6, %7 : vector<8x128xf32>
    %c0_7 = arith.constant 0 : index
    %c0_8 = arith.constant 0 : index
    %c0_9 = arith.constant 0 : index
    %9 = vector.load %arg3[%c0_7, %c0_8, %c0_9] : memref<1x8x128xf32, #tpu.memory_space<vmem>>, vector<1x8x128xf32>
    %10 = vector.shape_cast %9 : vector<1x8x128xf32> to vector<8x128xf32>
    %11 = vector.shape_cast %8 : vector<8x128xf32> to vector<1x8x128xf32>
    tpu.vector_store %arg3[%c0_7, %c0_8, %c0_9], %11 {strides = array<i32>} : memref<1x8x128xf32, #tpu.memory_space<vmem>>, vector<1x8x128xf32>,
    %c0_10 = arith.constant 0 : index
    %c0_11 = arith.constant 0 : index
    %c0_12 = arith.constant 0 : index
    %12 = vector.load %arg4[%c0_10, %c0_11, %c0_12] : memref<1x8x128xf32, #tpu.memory_space<vmem>>, vector<1x8x128xf32>
    %13 = vector.shape_cast %12 : vector<1x8x128xf32> to vector<8x128xf32>
    %14 = arith.mulf %4, %4 : vector<8x32x128xf32>
    %cst_13 = arith.constant dense<0.000000e+00> : vector<8x128xf32>
    %15 = vector.multi_reduction <add>, %14, %cst_13 [1] : vector<8x32x128xf32> to vector<8x128xf32>
    %16 = arith.addf %13, %15 : vector<8x128xf32>
    %c0_14 = arith.constant 0 : index
    %c0_15 = arith.constant 0 : index
    %c0_16 = arith.constant 0 : index
    %17 = vector.load %arg4[%c0_14, %c0_15, %c0_16] : memref<1x8x128xf32, #tpu.memory_space<vmem>>, vector<1x8x128xf32>
    %18 = vector.shape_cast %17 : vector<1x8x128xf32> to vector<8x128xf32>
    %19 = vector.shape_cast %16 : vector<8x128xf32> to vector<1x8x128xf32>
    tpu.vector_store %arg4[%c0_14, %c0_15, %c0_16], %19 {strides = array<i32>} : memref<1x8x128xf32, #tpu.memory_space<vmem>>, vector<1x8x128xf32>,
    return
  }
  func.func @transform_0(%arg0: i32, %arg1: i32) -> (i32, i32, i32, i32) {
    %c0_i32 = arith.constant 0 : i32
    %c0_i32_0 = arith.constant 0 : i32
    %c0_i32_1 = arith.constant 0 : i32
    return %arg0, %c0_i32, %arg1, %c0_i32_0 : i32, i32, i32, i32
  }
  func.func @transform_1(%arg0: i32, %arg1: i32) -> (i32, i32, i32) {
    %c0_i32 = arith.constant 0 : i32
    %c0_i32_0 = arith.constant 0 : i32
    %c0_i32_1 = arith.constant 0 : i32
    return %arg0, %c0_i32, %c0_i32_0 : i32, i32, i32
  }
  func.func @transform_2(%arg0: i32, %arg1: i32) -> (i32, i32, i32) {
    %c0_i32 = arith.constant 0 : i32
    %c0_i32_0 = arith.constant 0 : i32
    %c0_i32_1 = arith.constant 0 : i32
    return %arg0, %c0_i32, %c0_i32_0 : i32, i32, i32
  }
}

</mosaic_0001>

<bundles_post_ra>
// kernel: tpu_custom_call.1
= control target key start
LH: loop header
LB: loop body
LE: loop exit
PB: predicated region body
PF: predicated region fallthrough
CT: control target
= control target key end

     0   :  { %8 = vsyncpa [#allocation3], 0  ;;  %s1375_s0 = inlined_call_operand.hbm [shape: f32[2,8,64,128], index: 0, kind: input, shape index: {}]   ;;  %s1376_s1 = inlined_call_operand.hbm [shape: f32[2,8,128], index: 1, kind: output, shape index: {0}]   ;;  %s1377_s2 = inlined_call_operand.hbm [shape: f32[2,8,128], index: 2, kind: output, shape index: {1}]  }
   0x1   :  { %10 = vsyncpa [#allocation3 + $0x1], 0 }
   0x2   :  { %11 = vsyncpa [#allocation4], 0 }
   0x3   :  { %13 = vsyncpa [#allocation4 + $0x1], 0 }
   0x4   :  { %14 = vsyncpa [#allocation7], 0 }
   0x5   :  { %16 = vsyncpa [#allocation7 + $0x1], 0  ;;  %s939_s9 = smov 0   ;;  %s941_s10 = smov 0  }
   0x6   :  { %s943_s11 = smov 0   ;;  %s945_s12 = smov 0  }
   0x7   :  { %s947_s13 = smov 0   ;;  %s949_s14 = smov 0  }
   0x8   :  { %s951_s15 = smov 0   ;;  %s953_s16 = smov 0  }
   0x9   :  { %s955_s17 = smov 0   ;;  %s957_s18 = smov 0  }
   0xa   :  { %s959_s19 = smov 0  }
   0xb LB: > { %1382 = sst [smem:[#allocation14_spill]] %s905_s17  ;;  %s622_s20 = sadd.s32 4294967295, %s913_s19   ;;  %s913_s19 = sphi %s959_s19, %s22_s19   ;;  %s909_s18 = sphi %s957_s18, %s1393_s18   ;;  %s905_s17 = sphi %s955_s17, %s1392_s17   ;;  %s901_s16 = sphi %s953_s16, %s1391_s16   ;;  %s897_s15 = sphi %s951_s15, %s1390_s15   ;;  %s893_s14 = sphi %s949_s14, %s1399_s14   ;;  %s889_s13 = sphi %s947_s13, %s1398_s13   ;;  %s885_s12 = sphi %s945_s12, %s1397_s12   ;;  %s881_s11 = sphi %s943_s11, %s1396_s11   ;;  %s877_s10 = sphi %s941_s10, %s1395_s10   ;;  %s873_s9 = sphi %s939_s9, %s1394_s9  }
   0xc   : > { %1383 = sst [smem:[#allocation15_spill]] %s909_s18  ;;  %s623_s21 = sadd.s32 4294967294, %s913_s19  }
   0xd   : > { %s31_s22 = sadd.s32 1, %s905_s17  ;;  %s34_s23 = sadd.s32 1, %s909_s18 }
   0xe   : > { %p32_p0 = scmp.ge.s32.totalorder %s31_s22, 2  ;;  %s43_s24 = sadd.s32 1, %s893_s14 }
   0xf   : > { %p50_p1 = scmp.ne.s32.totalorder %s893_s14, %s889_s13  ;;  %p51_p2 = scmp.eq.s32.totalorder %s913_s19, 0 }
  0x10   : > { %s1401_s22 = smov (%p32_p0, %s31_s22), 0  ;;  %s1403_s23 = smov (!%p32_p0, %s34_s23), %s909_s18 }
  0x11   : > { %1384 = sst [smem:[#allocation16_spill]] %s1401_s22  ;;  %s39_s25 = ssub.s32 %s905_s17, %s1401_s22 }
  0x12   : > { %p1005_p3 = por %p51_p2, %p50_p1  ;;  %p36_p4 = scmp.ge.s32.totalorder %s1403_s23, 2 }
  0x13   : > { %p56_p5 = scmp.ne.s32.totalorder %s889_s13, %s885_s12  ;;  %p57_p6 = scmp.eq.s32.totalorder %s622_s20, 0 }
  0x14   : > { %s69_s27 = sadd.s32 1, %s881_s11  ;;  %s1405_s23 = smov (%p36_p4, %s1403_s23), 0 }
  0x15   : > { %1386 = sst [smem:[#allocation17_spill]] %s1405_s23  ;;  %p1013_p7 = por %p57_p6, %p56_p5 }
  0x16   : > { %p79_p8 = scmp.ne.s32.totalorder %s881_s11, %s877_s10  ;;  %s38_s29 = ssub.s32 %s909_s18, %s1405_s23 }
  0x17   : > { %p80_p9 = scmp.eq.s32.totalorder %s622_s20, 3  ;;  %s40_s30 = sor.u32 %s39_s25, %s38_s29 }
  0x18   : > { %p67_p10 = scmp.eq.s32.totalorder %s38_s29, 0  ;;  %p41_p11 = scmp.eq.s32.totalorder %s40_s30, 0 }
  0x19   : > { %p1021_p12 = por %p80_p9, %p79_p8  ;;  %p85_p13 = scmp.ne.s32.totalorder %s877_s10, %s873_s9 }
  0x1a   : > { %s1026_s4 = scalar_select %p67_p10, %s881_s11, %s69_s27  }
  0x1b   : > { %s1029_s5 = scalar_select %p41_p11, %s893_s14, %s43_s24  }
  0x1c   : > { %p86_p0 = scmp.eq.s32.totalorder %s623_s21, 3  ;;  %p625_p2 = scmp.ge.s32.totalorder %s913_s19, 4 }
  0x1e   : > { %p1033_p1 = por %p86_p0, %p85_p13  ;;  %128 = sbr.rel (%p625_p2) target bundleno = 53 (0x35), region = 16 }
  0x25   : > { %s132_s7 = sand.u32 1, %s893_s14   ;;  %s627_s8 = sshll.u32 %s905_s17, 2 }
  0x26   : > { %s626_s12 = sshll.u32 %s132_s7, 8  ;;  %s628_s20 = sshll.u32 %s909_s18, 6 }
  0x27   : > { %s142_s21 = sadd.s32 %s628_s20, %s627_s8  ;;  %s136_s24 = scalar_lea.vmem [#allocation2], %s626_s12 }
  0x28   : > { %s157_s25 = sshll.u32 %s136_s24, 4  ;;  %s629_s27 = sshll.u32 %s142_s21, 7  ;;  %s158_s25 = int_to_ptr.vmem [resolvable:$true] %s157_s25 }
  0x29   : > { %s643_s29 = scalar_select %p1005_p3, [#allocation0], [#allocation10] }
  0x2a   : > { %s915_s30 = smov 1024   ;;  %s916_s22 = smov 512  }
  0x2b   : > { %644 = sst [smem:[#allocation9]] (%p1005_p3), %s915_s30  ;;  %s917_s17 = smov 4  }
  0x2c   : > { %s149_s23 = sld [smem:[%s643_s29]]   ;;  %s918_s8 = smov 128  }
  0x2d   : > { %645 = sst [smem:[#allocation9 + $0x1]] (%p1005_p3), %s916_s22  ;;  %s144_s21 = scalar_lea.hbm %s1375_s0, %s629_s27 }
  0x2e   : > { %646 = sst [smem:[#allocation9 + $0x2]] (%p1005_p3), %s917_s17  ;;  %s919_s24 = smov 8  }
  0x2f   : > { %647 = sst [smem:[#allocation9 + $0x3]] (%p1005_p3), %s918_s8  ;;  %s133_s18 = scalar_lea.sflag [#allocation3], %s132_s7 }
  0x30   : > { %648 = sst [smem:[#allocation9 + $0x4]] (%p1005_p3), %s918_s8  ;;  %s920_s22 = smov [#allocation8]  }
  0x31   : > { %649 = sst [smem:[#allocation9 + $0x5]] (%p1005_p3), %s919_s24 }
  0x32   : > { %s630_s29 = sshll.u32 %s149_s23, 26 }
  0x33   : > { %s631_s30 = sadd.s32 134217728, %s630_s29 }
  0x34   : > { %650 = dma.general (%p1005_p3), %s144_s21, 4096, %s158_s25, %s133_s18, %s920_s22, [#allocation9], %s631_s30, 0  }
  0x35 PF: > { %p632_p4 = scmp.ge.s32.totalorder %s913_s19, 1  ;;  %p178_p5 = scmp.lt.s32.totalorder %s913_s19, 5 }
  0x37   : > { %p179_p6 = pnand %p632_p4, %p178_p5 }
  0x38   : > { %s184_s17 = sand.u32 (!%p179_p6), 1, %s889_s13  }
  0x39   : > { %182 = sbr.rel (%p179_p6) target bundleno = 158 (0x9e), region = 24  ;;  %s633_s27 = sshll.u32 (!%p179_p6), %s184_s17, 8 }
  0x3a   : > { %s185_s8 = scalar_lea.sflag (!%p179_p6), [#allocation3], %s184_s17  ;;  %s1063_s12 = scalar_lea.vmem (!%p179_p6), [#allocation2], %s633_s27 }
  0x40   : > { %860 = dma.done.wait (%p1013_p7), %s185_s8, 4096  }
  0x41   : > { %862 = vsyncadd (%p1013_p7), %s185_s8, 4294963200  ;;  %s1070_s18 = sand.u32 1, %s877_s10   ;;  %p636_p3 = scmp.ne.s32.totalorder %s897_s15, 0 }
  0x42   : > { %s634_s23 = sshll.u32 %s1070_s18, 3  ;;  %v921_v0 = vmov (!%p636_p3), 0.0  }
  0x43   : > { %s1073_s26 = scalar_lea.vmem [#allocation5], %s634_s23  ;;  %s1075_s7 = scalar_lea.vmem [#allocation6], %s634_s23 }
  0x44   : > { %218 = sbr.rel (%p636_p3) target bundleno = 75 (0x4b), region = 32  ;;  %219 = vst [vmem:[%s1073_s26] sm:$0xff] (!%p636_p3), %v921_v0  ;;  %220 = vst [vmem:[%s1075_s7] sm:$0xff] (!%p636_p3), %v921_v0 }
  0x4b PF: > { %v221_v1 = vld [vmem:[%s1063_s12] sm:$0xff]  ;;  %v222_v2 = vld [vmem:[%s1063_s12 + $0x8] sm:$0xff]  ;;  %v223_v3 = vld [vmem:[%s1063_s12 + $0x10] sm:$0xff]  ;;  %vm334_vm0 = vcmask 1041409   ;;  %vm336_vm1 = vcmask 1042434   ;;  %vm338_vm2 = vcmask 1043459  }
  0x4c   : > { %v224_v4 = vld [vmem:[%s1063_s12 + $0x18] sm:$0xff]  ;;  %v225_v5 = vld [vmem:[%s1063_s12 + $0x20] sm:$0xff]  ;;  %v226_v6 = vld [vmem:[%s1063_s12 + $0x28] sm:$0xff]  ;;  %v254_v7 = vadd.f32 %v222_v2, %v221_v1  ;;  %v1089_v12 = vmul.f32 %v221_v1, %v221_v1  ;;  %v1091_v13 = vmul.f32 %v222_v2, %v222_v2  ;;  %v1095_v17 = vmul.f32 %v223_v3, %v223_v3  ;;  %s639_s15 = sshll.u32 %s901_s16, 7  ;;  %s493_s28 = sshll.u32 %s1073_s26, 4  ;;  %s1263_s28 = int_to_ptr.vmem [resolvable:$true] %s493_s28 }
  0x4d   : > { %v227_v8 = vld [vmem:[%s1063_s12 + $0x30] sm:$0xff]  ;;  %v228_v9 = vld [vmem:[%s1063_s12 + $0x38] sm:$0xff]  ;;  %v229_v10 = vld [vmem:[%s1063_s12 + $0x40] sm:$0xff]  ;;  %v263_v11 = vadd.f32 %v226_v6, %v225_v5  ;;  %v1097_v18 = vmul.f32 %v224_v4, %v224_v4  ;;  %v1099_v19 = vmul.f32 %v225_v5, %v225_v5  ;;  %v1106_v25 = vmul.f32 %v226_v6, %v226_v6  ;;  %s1261_s21 = scalar_lea.hbm %s1376_s1, %s639_s15  ;;  %s475_s24 = scalar_lea.sflag [#allocation4], %s1070_s18 }
  0x4e   : > { %v230_v14 = vld [vmem:[%s1063_s12 + $0x48] sm:$0xff]  ;;  %v231_v15 = vld [vmem:[%s1063_s12 + $0x50] sm:$0xff]  ;;  %v255_v16 = vadd.f32 %v254_v7, %v223_v3  ;;  %v232_v20 = vld [vmem:[%s1063_s12 + $0x58] sm:$0xff]  ;;  %v1108_v26 = vmul.f32 %v227_v8, %v227_v8  ;;  %v1117_v31 = vmul.f32 %v228_v9, %v228_v9  ;;  %v1119_v32 = vmul.f32 %v229_v10, %v229_v10  ;;  %s759_s29 = scalar_lea.vmem %s1263_s28, 128  ;;  %s922_s30 = smov [#allocation5]  }
  0x4f   : > { %v233_v21 = vld [vmem:[%s1063_s12 + $0x60] sm:$0xff]  ;;  %v1104_v22 = vld [vmem:[%s1063_s12 + $0x68] sm:$0xff]  ;;  %v264_v23 = vadd.f32 %v263_v11, %v227_v8  ;;  %v272_v24 = vadd.f32 %v230_v14, %v229_v10  ;;  %v1122_v33 = vld [vmem:[%s1063_s12 + $0x70] sm:$0xff]  ;;  %v1126_v37 = vmul.f32 %v230_v14, %v230_v14  ;;  %v1138_v43 = vmul.f32 %v231_v15, %v231_v15  ;;  %p760_p7 = scmp.ne.s32.totalorder %s1263_s28, %s759_s29  ;;  %s763_s22 = sshll.u32 %s922_s30, 4  ;;  %s764_s22 = int_to_ptr.vmem [resolvable:$false] %s763_s22 }
  0x50   : > { %v1111_v27 = vld [vmem:[%s1063_s12 + $0x80] sm:$0xff]  ;;  %v1114_v28 = vld [vmem:[%s1063_s12 + $0x88] sm:$0xff]  ;;  %v256_v29 = vadd.f32 %v255_v16, %v224_v4  ;;  %v281_v30 = vadd.f32 %v1104_v22, %v233_v21  ;;  %v1129_v38 = vld [vmem:[%s1063_s12 + $0x90] sm:$0xff]  ;;  %v1140_v44 = vmul.f32 %v232_v20, %v232_v20  ;;  %v1163_v57 = vmul.f32 %v233_v21, %v233_v21  ;;  %s765_s17 = scalar_lea.vmem %s764_s22, 256  ;;  %p766_p10 = scmp.lt.s32.totalorder %s1263_s28, %s764_s22 }
  0x51   : > { %v265_v34 = vadd.f32 %v264_v23, %v228_v9  ;;  %v273_v35 = vadd.f32 %v272_v24, %v231_v15  ;;  %v290_v36 = vadd.f32 %v1114_v28, %v1111_v27  ;;  %v1132_v39 = vld [vmem:[%s1063_s12 + $0xa0] sm:$0xff]  ;;  %v1135_v40 = vld [vmem:[%s1063_s12 + $0xa8] sm:$0xff]  ;;  %v1143_v45 = vld [vmem:[%s1063_s12 + $0x78] sm:$0xff]  ;;  %vm340_vm3 = vcmask 1044484   ;;  %p761_p8 = pnand %p760_p7, %p1021_p12  ;;  %p767_p11 = scmp.lt.s32.totalorder %s765_s17, %s759_s29 }
  0x52   : > { %v257_v41 = vrot.slane %v256_v29, 4  ;;  %v282_v42 = vadd.f32 %v281_v30, %v1122_v33  ;;  %v1146_v46 = vld [vmem:[%s1063_s12 + $0xc0] sm:$0xff]  ;;  %v1149_v47 = vld [vmem:[%s1063_s12 + $0xc8] sm:$0xff]  ;;  %v299_v51 = vadd.f32 %v1135_v40, %v1132_v39  ;;  %v1155_v52 = vld [vmem:[%s1063_s12 + $0x98] sm:$0xff]  ;;  %vm342_vm4 = vcmask 1045509  }
  0x53   : > { %v266_v48 = vrot.slane %v265_v34, 4  ;;  %v274_v49 = vadd.f32 %v273_v35, %v232_v20  ;;  %v291_v50 = vadd.f32 %v290_v36, %v1129_v38  ;;  %v1158_v53 = vld [vmem:[%s1063_s12 + $0xb0] sm:$0xff]  ;;  %v308_v56 = vadd.f32 %v1149_v47, %v1146_v46  ;;  %v1169_v59 = vld [vmem:[%s1063_s12 + $0xe0] sm:$0xff]  ;;  %v1172_v60 = vld [vmem:[%s1063_s12 + $0xe8] sm:$0xff]  ;;  %p762_p9 = pneg %p761_p8  ;;  %p768_p13 = por %p767_p11, %p766_p10 }
  0x54   : > { %v258_v54 = vadd.f32 %v257_v41, %v256_v29  ;;  %v283_v55 = vadd.f32 %v282_v42, %v1143_v45  ;;  %v1166_v58 = vld [vmem:[%s1063_s12 + $0xd0] sm:$0xff]  ;;  %v300_v0 = vadd.f32 %v299_v51, %v1158_v53  ;;  %v1177_v1 = vld [vmem:[%s1063_s12 + $0xb8] sm:$0xff]  ;;  %v317_v5 = vadd.f32 %v1172_v60, %v1169_v59 }
  0x55   : > { %v267_v61 = vadd.f32 %v266_v48, %v265_v34  ;;  %v275_v62 = vrot.slane %v274_v49, 4  ;;  %v292_v63 = vadd.f32 %v291_v50, %v1155_v52  ;;  %v309_v4 = vadd.f32 %v308_v56, %v1166_v58  ;;  %v1183_v6 = vld [vmem:[%s1063_s12 + $0xd8] sm:$0xff]  ;;  %v1186_v7 = vld [vmem:[%s1063_s12 + $0xf0] sm:$0xff]  ;;  %p769_p0 = pnand %p768_p13, %p762_p9 }
  0x56   : > { %v259_v2 = vrot.slane %v258_v54, 2  ;;  %v284_v3 = vrot.slane %v283_v55, 4  ;;  %v301_v11 = vadd.f32 %v300_v0, %v1177_v1  ;;  %v318_v20 = vadd.f32 %v317_v5, %v1186_v7  ;;  %v1192_v21 = vld [vmem:[%s1063_s12 + $0xf8] sm:$0xff] }
  0x57   : > { %v268_v8 = vrot.slane %v267_v61, 2  ;;  %v276_v9 = vadd.f32 %v275_v62, %v274_v49  ;;  %v293_v10 = vrot.slane %v292_v63, 4  ;;  %v310_v16 = vadd.f32 %v309_v4, %v1183_v6 }
  0x58   : > { %v260_v14 = vadd.f32 %v259_v2, %v258_v54  ;;  %v285_v15 = vadd.f32 %v284_v3, %v283_v55  ;;  %v302_v30 = vrot.slane %v301_v11, 4  ;;  %v319_v41 = vadd.f32 %v318_v20, %v1192_v21 }
  0x59   : > { %v269_v23 = vadd.f32 %v268_v8, %v267_v61  ;;  %v277_v24 = vrot.slane %v276_v9, 2  ;;  %v294_v29 = vadd.f32 %v293_v10, %v292_v63  ;;  %v311_v36 = vrot.slane %v310_v16, 4 }
  0x5a   : > { %v261_v34 = vrot.slane %v260_v14, 1  ;;  %v286_v35 = vrot.slane %v285_v15, 2  ;;  %v303_v50 = vadd.f32 %v302_v30, %v301_v11  ;;  %vm344_vm5 = vcmask 1046534  }
  0x5b   : > { %v270_v42 = vrot.slane %v269_v23, 1  ;;  %v278_v48 = vadd.f32 %v277_v24, %v276_v9  ;;  %v295_v49 = vrot.slane %v294_v29, 2  ;;  %v312_v55 = vadd.f32 %v311_v36, %v310_v16 }
  0x5c   : > { %v262_v51 = vadd.f32 %v261_v34, %v260_v14  ;;  %v287_v54 = vadd.f32 %v286_v35, %v285_v15  ;;  %v320_v56 = vrot.slane %v319_v41, 4  ;;  %v304_v63 = vrot.slane %v303_v50, 2 }
  0x5d   : > { %v271_v62 = vadd.f32 %v270_v42, %v269_v23  ;;  %v279_v61 = vrot.slane %v278_v48, 1  ;;  %v296_v0 = vadd.f32 %v295_v49, %v294_v29  ;;  %vm346_vm6 = vcmask 1047559  }
  0x5e   : > { %v288_v2 = vrot.slane %v287_v54, 1  ;;  %v313_v3 = vrot.slane %v312_v55, 2  ;;  %v321_v4 = vadd.f32 %v320_v56, %v319_v41  ;;  %v365_v5 = vmul.f32 %v1104_v22, %v1104_v22 }
  0x5f   : > { %v280_v8 = vadd.f32 %v279_v61, %v278_v48  ;;  %v297_v9 = vrot.slane %v296_v0, 1  ;;  %v305_v10 = vadd.f32 %v304_v63, %v303_v50  ;;  %v335_v11 = vsel %vm334_vm0, %v271_v62, %v262_v51 }
  0x60   : > { %v289_v14 = vadd.f32 %v288_v2, %v287_v54  ;;  %v314_v15 = vadd.f32 %v313_v3, %v312_v55  ;;  %v322_v16 = vrot.slane %v321_v4, 2  ;;  %v366_v20 = vmul.f32 %v1122_v33, %v1122_v33  ;;  %v253_v55 = vld [vmem:[%s1073_s26] sm:$0xff] }
  0x61   : > { %v298_v23 = vadd.f32 %v297_v9, %v296_v0  ;;  %v306_v24 = vrot.slane %v305_v10, 1  ;;  %v337_v29 = vsel %vm336_vm1, %v280_v8, %v335_v11  ;;  %v1203_v30 = vmul.f32 %v1143_v45, %v1143_v45 }
  0x62   : > { %v315_v22 = vrot.slane %v314_v15, 1  ;;  %v323_v34 = vadd.f32 %v322_v16, %v321_v4  ;;  %v339_v35 = vsel %vm338_vm2, %v289_v14, %v337_v29  ;;  %v368_v36 = vmul.f32 %v1111_v27, %v1111_v27 }
  0x63   : > { %v307_v41 = vadd.f32 %v306_v24, %v305_v10  ;;  %v341_v42 = vsel %vm340_vm3, %v298_v23, %v339_v35  ;;  %v369_v33 = vmul.f32 %v1114_v28, %v1114_v28  ;;  %v370_v45 = vmul.f32 %v1129_v38, %v1129_v38 }
  0x64   : > { %v316_v48 = vadd.f32 %v315_v22, %v314_v15  ;;  %v324_v49 = vrot.slane %v323_v34, 1  ;;  %v1215_v50 = vmul.f32 %v1155_v52, %v1155_v52  ;;  %v372_v27 = vmul.f32 %v1132_v39, %v1132_v39 }
  0x65   : > { %v343_v51 = vsel %vm342_vm4, %v307_v41, %v341_v42  ;;  %v373_v54 = vmul.f32 %v1135_v40, %v1135_v40  ;;  %v374_v28 = vmul.f32 %v1158_v53, %v1158_v53  ;;  %v1226_v38 = vmul.f32 %v1177_v1, %v1177_v1 }
  0x66   : > { %v325_v56 = vadd.f32 %v324_v49, %v323_v34  ;;  %v345_v52 = vsel %vm344_vm5, %v316_v48, %v343_v51  ;;  %v376_v62 = vmul.f32 %v1146_v46, %v1146_v46  ;;  %v377_v39 = vmul.f32 %v1149_v47, %v1149_v47 }
  0x67   : > { %v378_v40 = vmul.f32 %v1166_v58, %v1166_v58  ;;  %v379_v53 = vmul.f32 %v1183_v6, %v1183_v6  ;;  %v380_v1 = vmul.f32 %v1169_v59, %v1169_v59  ;;  %v381_v61 = vmul.f32 %v1172_v60, %v1172_v60 }
  0x68   : > { %v347_v46 = vsel %vm346_vm6, %v325_v56, %v345_v52  ;;  %v382_v47 = vmul.f32 %v1186_v7, %v1186_v7  ;;  %v383_v0 = vmul.f32 %v1192_v21, %v1192_v21  ;;  %v384_v58 = vadd.f32 %v1091_v13, %v1089_v12 }
  0x69   : > { %v349_v63 = vadd.f32 %v347_v46, %v253_v55  ;;  %v393_v6 = vadd.f32 %v1106_v25, %v1099_v19  ;;  %v402_v59 = vadd.f32 %v1126_v37, %v1119_v32  ;;  %v411_v60 = vadd.f32 %v365_v5, %v1163_v57 }
  0x6a   : > { %v385_v12 = vadd.f32 %v384_v58, %v1095_v17  ;;  %v420_v13 = vadd.f32 %v369_v33, %v368_v36  ;;  %v429_v19 = vadd.f32 %v373_v54, %v372_v27  ;;  %v438_v25 = vadd.f32 %v377_v39, %v376_v62 }
  0x6b   : > { %350 = vst [vmem:[%s1073_s26] sm:$0xff] %v349_v63  ;;  %v394_v32 = vadd.f32 %v393_v6, %v1108_v26  ;;  %v403_v37 = vadd.f32 %v402_v59, %v1138_v43  ;;  %v412_v57 = vadd.f32 %v411_v60, %v366_v20  ;;  %v447_v7 = vadd.f32 %v381_v61, %v380_v1 }
  0x6c   : > { %v386_v21 = vadd.f32 %v385_v12, %v1097_v18  ;;  %v421_v2 = vadd.f32 %v420_v13, %v370_v45  ;;  %v430_v3 = vadd.f32 %v429_v19, %v374_v28  ;;  %v439_v4 = vadd.f32 %v438_v25, %v378_v40 }
  0x6d   : > { %772 = shalt.err (!%p769_p0)
}
  0x6e   : > { %s773_s27 = scalar_lea.hbm %s1261_s21, 128  ;;  %s777_s23 = scalar_lea.hbm %s1376_s1, 256 }
  0x6f   : > { %p774_p2 = scmp.ne.s32.totalorder %s1261_s21, %s773_s27  ;;  %p778_p6 = scmp.lt.u32.totalorder %s1261_s21, %s1376_s1 }
  0x70   : > { %p779_p3 = scmp.lt.u32.totalorder %s777_s23, %s773_s27  ;;  %p781_p8 = scmp.lt.u32.totalorder %s773_s27, %s1261_s21 }
  0x71   : > { %p775_p4 = pnand %p774_p2, %p1021_p12 }
  0x72   : > { %p780_p7 = por %p779_p3, %p778_p6 }
  0x73   : > { %p776_p5 = pneg %p775_p4 }
  0x74   : > { %p782_p9 = por %p781_p8, %p780_p7 }
  0x76   : > { %p783_p10 = pnand %p782_p9, %p776_p5 }
  0x78   : > { %786 = shalt.err (!%p783_p10)
}
  0x79   : > { %652 = dma.vmem_to_hbm [thread:$0]  (%p1021_p12), %s1263_s28, 128, %s1261_s21, %s475_s24   ;;  %v395_v17 = vadd.f32 %v394_v32, %v1117_v31  ;;  %v404_v18 = vadd.f32 %v403_v37, %v1140_v44  ;;  %v413_v26 = vadd.f32 %v412_v57, %v1203_v30  ;;  %v448_v43 = vadd.f32 %v447_v7, %v382_v47 }
  0x7a   : > { %v387_v5 = vrot.slane %v386_v21, 4  ;;  %v422_v8 = vadd.f32 %v421_v2, %v1215_v50  ;;  %v431_v9 = vadd.f32 %v430_v3, %v1226_v38  ;;  %v440_v10 = vadd.f32 %v439_v4, %v379_v53  ;;  %s506_s28 = sshll.u32 %s1075_s7, 4  ;;  %s1311_s24 = scalar_lea.hbm %s1377_s2, %s639_s15  ;;  %s1313_s28 = int_to_ptr.vmem [resolvable:$true] %s506_s28 }
  0x7b   : > { %v396_v11 = vrot.slane %v395_v17, 4  ;;  %v405_v14 = vrot.slane %v404_v18, 4  ;;  %v414_v15 = vrot.slane %v413_v26, 4  ;;  %v449_v16 = vadd.f32 %v448_v43, %v383_v0  ;;  %s480_s29 = scalar_lea.sflag [#allocation7], %s1070_s18  ;;  %s787_s30 = scalar_lea.vmem %s1313_s28, 128 }
  0x7c   : > { %v388_v20 = vadd.f32 %v387_v5, %v386_v21  ;;  %v423_v23 = vrot.slane %v422_v8, 4  ;;  %v432_v24 = vrot.slane %v431_v9, 4  ;;  %v441_v29 = vrot.slane %v440_v10, 4  ;;  %v351_v21 = vld [vmem:[%s1075_s7] sm:$0xff]  ;;  %p788_p11 = scmp.ne.s32.totalorder %s1313_s28, %s787_s30  ;;  %s923_s22 = smov [#allocation6]  }
  0x7d   : > { %v397_v31 = vadd.f32 %v396_v11, %v395_v17  ;;  %v406_v22 = vadd.f32 %v405_v14, %v404_v18  ;;  %v415_v44 = vadd.f32 %v414_v15, %v413_v26  ;;  %v450_v34 = vrot.slane %v449_v16, 4  ;;  %s791_s17 = sshll.u32 %s923_s22, 4  ;;  %s792_s17 = int_to_ptr.vmem [resolvable:$false] %s791_s17 }
  0x7e   : > { %v389_v30 = vrot.slane %v388_v20, 2  ;;  %v424_v35 = vadd.f32 %v423_v23, %v422_v8  ;;  %v433_v36 = vadd.f32 %v432_v24, %v431_v9  ;;  %v442_v41 = vadd.f32 %v441_v29, %v440_v10  ;;  %p789_p13 = pnand %p788_p11, %p1021_p12  ;;  %s793_s16 = scalar_lea.vmem %s792_s17, 256 }
  0x7f   : > { %v398_v42 = vrot.slane %v397_v31, 2  ;;  %v407_v33 = vrot.slane %v406_v22, 2  ;;  %v416_v45 = vrot.slane %v415_v44, 2  ;;  %v451_v48 = vadd.f32 %v450_v34, %v449_v16  ;;  %p794_p2 = scmp.lt.s32.totalorder %s1313_s28, %s792_s17  ;;  %p795_p4 = scmp.lt.s32.totalorder %s793_s16, %s787_s30 }
  0x80   : > { %v390_v49 = vadd.f32 %v389_v30, %v388_v20  ;;  %v425_v50 = vrot.slane %v424_v35, 2  ;;  %v434_v27 = vrot.slane %v433_v36, 2  ;;  %v443_v51 = vrot.slane %v442_v41, 2  ;;  %p790_p0 = pneg %p789_p13 }
  0x81   : > { %v399_v54 = vadd.f32 %v398_v42, %v397_v31  ;;  %v408_v28 = vadd.f32 %v407_v33, %v406_v22  ;;  %v417_v38 = vadd.f32 %v416_v45, %v415_v44  ;;  %v452_v55 = vrot.slane %v451_v48, 2  ;;  %p796_p5 = por %p795_p4, %p794_p2 }
  0x82   : > { %v391_v56 = vrot.slane %v390_v49, 1  ;;  %v426_v52 = vadd.f32 %v425_v50, %v424_v35  ;;  %v435_v62 = vadd.f32 %v434_v27, %v433_v36  ;;  %v444_v39 = vadd.f32 %v443_v51, %v442_v41 }
  0x83   : > { %v400_v40 = vrot.slane %v399_v54, 1  ;;  %v409_v53 = vrot.slane %v408_v28, 1  ;;  %v418_v1 = vrot.slane %v417_v38, 1  ;;  %v453_v61 = vadd.f32 %v452_v55, %v451_v48  ;;  %p797_p6 = pnand %p796_p5, %p790_p0 }
  0x84   : > { %v392_v46 = vadd.f32 %v391_v56, %v390_v49  ;;  %v427_v47 = vrot.slane %v426_v52, 1  ;;  %v436_v0 = vrot.slane %v435_v62, 1  ;;  %v445_v58 = vrot.slane %v444_v39, 1 }
  0x85   : > { %v401_v63 = vadd.f32 %v400_v40, %v399_v54  ;;  %v410_v6 = vadd.f32 %v409_v53, %v408_v28  ;;  %v419_v59 = vadd.f32 %v418_v1, %v417_v38  ;;  %v454_v60 = vrot.slane %v453_v61, 1 }
  0x86   : > { %v428_v12 = vadd.f32 %v427_v47, %v426_v52  ;;  %v437_v13 = vadd.f32 %v436_v0, %v435_v62  ;;  %v446_v25 = vadd.f32 %v445_v58, %v444_v39 }
  0x87   : > { %v464_v19 = vsel %vm334_vm0, %v401_v63, %v392_v46  ;;  %v455_v37 = vadd.f32 %v454_v60, %v453_v61 }
  0x88   : > { %v465_v32 = vsel %vm336_vm1, %v410_v6, %v464_v19 }
  0x89   : > { %v466_v57 = vsel %vm338_vm2, %v419_v59, %v465_v32 }
  0x8a   : > { %v467_v7 = vsel %vm340_vm3, %v428_v12, %v466_v57 }
  0x8b   : > { %v468_v2 = vsel %vm342_vm4, %v437_v13, %v467_v7 }
  0x8c   : > { %v469_v3 = vsel %vm344_vm5, %v446_v25, %v468_v2 }
  0x8d   : > { %v470_v4 = vsel %vm346_vm6, %v455_v37, %v469_v3 }
  0x8e   : > { %v472_v17 = vadd.f32 %v470_v4, %v351_v21 }
  0x90   : > { %473 = vst [vmem:[%s1075_s7] sm:$0xff] %v472_v17 }
  0x91   : > { %800 = shalt.err (!%p797_p6)
}
  0x92   : > { %s801_s18 = scalar_lea.hbm %s1311_s24, 128  ;;  %s805_s27 = scalar_lea.hbm %s1377_s2, 256 }
  0x93   : > { %p802_p3 = scmp.ne.s32.totalorder %s1311_s24, %s801_s18  ;;  %p806_p9 = scmp.lt.u32.totalorder %s1311_s24, %s1377_s2 }
  0x94   : > { %p807_p10 = scmp.lt.u32.totalorder %s805_s27, %s801_s18  ;;  %p809_p13 = scmp.lt.u32.totalorder %s801_s18, %s1311_s24 }
  0x95   : > { %p803_p7 = pnand %p802_p3, %p1021_p12 }
  0x96   : > { %p808_p11 = por %p807_p10, %p806_p9 }
  0x97   : > { %p804_p8 = pneg %p803_p7 }
  0x98   : > { %p810_p0 = por %p809_p13, %p808_p11 }
  0x9a   : > { %p811_p2 = pnand %p810_p0, %p804_p8 }
  0x9c   : > { %814 = shalt.err (!%p811_p2)
}
  0x9d   : > { %653 = dma.vmem_to_hbm [thread:$0]  (%p1021_p12), %s1313_s28, 128, %s1311_s24, %s480_s29  }
  0x9e PF: > { %p663_p4 = scmp.ge.s32.totalorder %s913_s19, 2  ;;  %s518_s23 = sand.u32 1, %s873_s9  }
  0x9f   : > { %s519_s26 = scalar_lea.sflag [#allocation4], %s518_s23 }
  0xa0   : > { %p657_p5 = pnand %p663_p4, %p1033_p1 }
  0xa2   : > { %864 = dma.done.wait (!%p657_p5), %s519_s26, 128  }
  0xa3   : > { %866 = vsyncadd (!%p657_p5), %s519_s26, 4294967168  ;;  %s528_s25 = scalar_lea.sflag [#allocation7], %s518_s23 }
  0xa4   : > { %868 = dma.done.wait (!%p657_p5), %s528_s25, 128  }
  0xa5   : > { %870 = vsyncadd (!%p657_p5), %s528_s25, 4294967168  ;;  %s22_s19 = sadd.s32 1, %s913_s19   ;;  %s1390_s15 = sld [smem:[#allocation14_spill]] }
  0xa6   : > { %p19_p6 = scmp.ge.s32.totalorder %s22_s19, 6   ;;  %s1391_s16 = sld [smem:[#allocation15_spill]] }
  0xa7   : > { %s1392_s17 = sld [smem:[#allocation16_spill]]  ;;  %s1393_s18 = sld [smem:[#allocation17_spill]] }
  0xa8   : > { %s1394_s9 = smov %s877_s10  ;;  %s1395_s10 = smov %s881_s11 }
  0xa9   : > { %s1396_s11 = smov %s1026_s4  ;;  %s1397_s12 = smov %s889_s13 }
  0xaa   : > { %s1398_s13 = smov %s893_s14  ;;  %s1399_s14 = smov %s1029_s5 }
  0xab   :  { %21 = sbr.rel (!%p19_p6) target bundleno = 11 (0xb), region = 95 }
  0xb2   :  { %533 = vsyncpa [#allocation3], 1 }
  0xb3   :  { %535 = vsyncpa [#allocation3 + $0x1], 1 }
  0xb4   :  { %536 = vsyncpa [#allocation4], 1 }
  0xb5   :  { %538 = vsyncpa [#allocation4 + $0x1], 1 }
  0xb6   :  { %539 = vsyncpa [#allocation7], 1 }
  0xb7   :  { %541 = vsyncpa [#allocation7 + $0x1], 1 }

</bundles_post_ra>
